<compile_context>
chip_gen: v5e
topology: v5e:2x2
jax: 0.10.0
libtpu: 0.0.40
codegen_flags: <defaults>
</compile_context>

<pallas_src>
import functools

import jax
import jax.numpy as jnp
from jax import lax
from jax.experimental import pallas as pl
from jax.experimental.pallas import tpu as pltpu

_ONE_HOT_EPS = 1e-6       # hardcoded in the reference `one_hot` helper
_NUM_F32_TEMPS = 10       # live (C, ts) f32 intermediates materialized by Mosaic


def _cdiv(a, b):
    return -(-a // b)


def _round_up(a, b):
    return ((a + b - 1) // b) * b


def _device_budgets():
    """(live-VMEM compute budget, vmem_limit_bytes-or-None) per TPU generation."""
    try:
        kind = jax.devices()[0].device_kind.lower()
    except Exception:
        kind = ""
    if "v7" in kind or "7x" in kind:                  # 64 MiB VMEM per TensorCore
        return 20 << 20, 40 << 20
    if any(g in kind for g in ("v4", "v5", "v6")):    # 128 MiB VMEM
        return 28 << 20, 64 << 20
    return 12 << 20, None                             # unknown generation: stay safe


def _integer_power(x, n):
    """x ** n for python int n >= 1 via repeated squaring (VALU-minimal)."""
    result = None
    base = x
    while True:
        if n & 1:
            result = base if result is None else result * base
        n >>= 1
        if n == 0:
            return result
        base = base * base


def _focal_weighted_logp(x, gamma, class_axis):
    """(1 - softmax(x))**gamma * log_softmax(x) along `class_axis` (f32 in/out)."""
    m = jnp.max(x, axis=class_axis, keepdims=True)
    z = x - m
    e = jnp.exp(z)
    s = jnp.sum(e, axis=class_axis, keepdims=True)
    logp = z - jnp.log(s)                             # exact log_softmax
    gm = float(gamma)
    if gm == 0.0:
        return logp
    p = e * pl.reciprocal(s, approx=True)             # softmax (EUP vrcp)
    one_minus_p = 1.0 - p
    if gm.is_integer() and 0.0 < gm <= 32.0:
        w = _integer_power(one_minus_p, int(gm))      # gamma=2 -> one multiply
    else:
        # TODO(synk): non-integer gamma via exp(g*log(.)); a base of exactly 0
        # maps to tiny**gamma instead of exactly 0 like torch.pow (harmless for
        # gamma > 0).
        w = jnp.exp(gm * jnp.log(jnp.maximum(one_minus_p,
                                             jnp.finfo(jnp.float32).tiny)))
    return w * logp


def _focal_kernel_spatial(x_ref, t_ref, o_ref, *, alpha, gamma):
    # x_ref: (1, C, TS) logits (classes on sublanes, spatial on lanes)
    # t_ref: (1, 1, TS) integer labels ; o_ref: (1, 1, TS) f32 loss
    x = x_ref[0].astype(jnp.float32)                          # (C, TS)
    c, ts = x.shape
    wl = _focal_weighted_logp(x, gamma, class_axis=0)         # (C, TS)
    cls = lax.broadcasted_iota(jnp.int32, (c, ts), 0)
    onehot = (cls == t_ref[0].astype(jnp.int32)).astype(jnp.float32) + _ONE_HOT_EPS
    # scalar -alpha applied AFTER the class reduction: (1, TS), not (C, TS)
    o_ref[0] = (-alpha) * jnp.sum(onehot * wl, axis=0, keepdims=True)


def _focal_kernel_rows(x_ref, t_ref, o_ref, *, alpha, gamma):
    # x_ref: (TN, C) logits (batch rows on sublanes, classes on lanes)
    # t_ref: (TN, 1) integer labels ; o_ref: (TN, 1) f32 loss
    x = x_ref[...].astype(jnp.float32)
    tn, c = x.shape
    wl = _focal_weighted_logp(x, gamma, class_axis=1)         # (TN, C)
    cls = lax.broadcasted_iota(jnp.int32, (tn, c), 1)
    onehot = (cls == t_ref[...].astype(jnp.int32)).astype(jnp.float32) + _ONE_HOT_EPS
    o_ref[...] = (-alpha) * jnp.sum(onehot * wl, axis=1, keepdims=True)


def _focal_spatial(x, t, alpha, gamma, budget, vmem_limit):
    """x: (N, C, S) logits, t: (N, 1, S) integer labels. Returns (N, S) f32."""
    N, C, S = x.shape
    itembytes = jnp.dtype(x.dtype).itemsize
    lbl_bytes = jnp.dtype(t.dtype).itemsize

    # Lane tile: budget the 2x double-buffered input rows plus the ~10 live
    # (C, ts) f32 intermediates; round down to 128 lanes, cap at 16K lanes.
    per_lane = C * (2 * itembytes + _NUM_F32_TEMPS * 4) + 2 * lbl_bytes + 2 * 4
    ts = max(128, (budget // per_lane) // 128 * 128)
    ts = min(ts, 16 * 1024)

    if S < 128:
        # Tiny spatial extent: pad the lane axis to a single 128-lane vreg
        # (negligible copy) instead of exposing a block wider than the array.
        ts = 128
        S_arr = 128
        x = jnp.pad(x, ((0, 0), (0, 0), (0, S_arr - S)))
        t = jnp.pad(t, ((0, 0), (0, 0), (0, S_arr - S)))
    else:
        S_arr = S
        ts = min(ts, (S // 128) * 128)   # ts <= S; ragged last block is masked
        # Keep >= ~8 grid steps so both v7x TensorCores (and the DMA pipeline)
        # have work; floor at 512 lanes for DMA efficiency.
        while ts > 512 and N * _cdiv(S, ts) < 8:
            ts = max(512, ((ts // 2) // 128) * 128)

    cp_kwargs = dict(dimension_semantics=("parallel", "parallel"))
    if vmem_limit is not None:
        cp_kwargs["vmem_limit_bytes"] = vmem_limit

    out = pl.pallas_call(
        functools.partial(_focal_kernel_spatial,
                          alpha=float(alpha), gamma=float(gamma)),
        out_shape=jax.ShapeDtypeStruct((N, 1, S_arr), jnp.float32),
        grid_spec=pltpu.PrefetchScalarGridSpec(
            num_scalar_prefetch=0,
            grid=(N, _cdiv(S_arr, ts)),
            in_specs=[
                pl.BlockSpec((1, C, ts), lambda b, s: (b, 0, s)),
                pl.BlockSpec((1, 1, ts), lambda b, s: (b, 0, s)),
            ],
            out_specs=pl.BlockSpec((1, 1, ts), lambda b, s: (b, 0, s)),
        ),
        compiler_params=pltpu.CompilerParams(**cp_kwargs),
    )(x, t)
    return out[:, 0, :S]


def _focal_rows(x, t, alpha, gamma, budget, vmem_limit):
    """x: (N, C) logits, t: (N, 1) int32 labels. Returns (N,) f32."""
    N, C = x.shape
    itembytes = jnp.dtype(x.dtype).itemsize

    if N < 8:
        tn = N                                       # block == full batch dim
    else:
        per_row = C * (2 * itembytes + _NUM_F32_TEMPS * 4) + 16
        tn = max(8, (budget // per_row) // 8 * 8)
        tn = min(tn, _round_up(_cdiv(N, 8), 8))      # aim for ~8 grid steps

    cp_kwargs = dict(dimension_semantics=("parallel",))
    if vmem_limit is not None:
        cp_kwargs["vmem_limit_bytes"] = vmem_limit

    out = pl.pallas_call(
        functools.partial(_focal_kernel_rows,
                          alpha=float(alpha), gamma=float(gamma)),
        out_shape=jax.ShapeDtypeStruct((N, 1), jnp.float32),
        grid_spec=pltpu.PrefetchScalarGridSpec(
            num_scalar_prefetch=0,
            grid=(_cdiv(N, tn),),
            in_specs=[
                pl.BlockSpec((tn, C), lambda i: (i, 0)),
                pl.BlockSpec((tn, 1), lambda i: (i, 0)),
            ],
            out_specs=pl.BlockSpec((tn, 1), lambda i: (i, 0)),
        ),
        compiler_params=pltpu.CompilerParams(**cp_kwargs),
    )(x, t)
    return out[:, 0]


def focal_loss_pallas(logits, target, alpha, gamma=2.0, reduction="none",
                      eps=None, compute_input_dtype=None):
    """Pallas equivalent of focal_loss(input, target, alpha, gamma, reduction).

    `compute_input_dtype=jnp.bfloat16` halves the dominant HBM stream (useful
    on v5e); in-kernel math stays float32 either way.  Default None keeps the
    caller's dtype to match the PyTorch f32 semantics exactly.
    """
    del eps  # deprecated in the reference implementation, unused
    if logits.ndim < 2:
        raise ValueError(f"Invalid input shape, we expect BxCx*. Got: {logits.shape}")
    N = logits.shape[0]
    C = logits.shape[1]
    spatial = logits.shape[2:]
    S = 1
    for d in spatial:
        S *= int(d)

    if compute_input_dtype is not None:
        logits = logits.astype(compute_input_dtype)

    budget, vmem_limit = _device_budgets()

    if S == 1:
        # Classification-style input: native (N, C) layout, batch on sublanes,
        # classes on lanes — no 128x lane-padding blow-up.
        x = logits.reshape(N, C)
        t = target.reshape(N, 1).astype(jnp.int32)
        loss_tmp = _focal_rows(x, t, alpha, gamma, budget, vmem_limit)
    else:
        # NCHW-style logits consumed directly: free reshape only, classes on
        # sublanes / spatial on lanes.
        x = logits.reshape(N, C, S)
        lbl_dtype = jnp.int16 if C <= 32767 else jnp.int32
        t = target.reshape(N, 1, S).astype(lbl_dtype)
        loss_tmp = _focal_spatial(x, t, alpha, gamma, budget, vmem_limit)

    loss_tmp = loss_tmp.reshape((N,) + spatial)   # einsum 'bc...,bc...->b...'

    if reduction == "none":
        return loss_tmp
    elif reduction == "mean":
        return jnp.mean(loss_tmp)
    elif reduction == "sum":
        return jnp.sum(loss_tmp)
    else:
        raise NotImplementedError(f"Invalid reduction mode: {reduction}")


def _focal_loss_ref(logits, target, alpha, gamma, reduction):
    """Pure-JAX reference mirroring the PyTorch focal_loss semantics."""
    p = jax.nn.softmax(logits, axis=1)
    logp = jax.nn.log_softmax(logits, axis=1)
    onehot = jax.nn.one_hot(target, logits.shape[1], axis=1,
                            dtype=logits.dtype) + _ONE_HOT_EPS
    focal = -alpha * jnp.power(1.0 - p, gamma) * logp
    loss_tmp = jnp.sum(onehot * focal, axis=1)
    if reduction == "none":
        return loss_tmp
    if reduction == "mean":
        return jnp.mean(loss_tmp)
    return jnp.sum(loss_tmp)


if __name__ == "__main__":
    # FocalLoss(alpha=0.5, gamma=2.0) as in the module docstring example.
    alpha, gamma = 0.5, 2.0
    key = jax.random.PRNGKey(0)
    k1, k2, k3, k4, k5, k6 = jax.random.split(key, 6)

    # 1) (N, C, H, W) input, reduction='mean' — small-spatial path.
    N, C, H, W = 2, 10, 4, 4
    logits = jax.random.normal(k1, (N, C, H, W), dtype=jnp.float32)
    target = jax.random.randint(k2, (N, H, W), 0, C, dtype=jnp.int32)
    loss = jax.block_until_ready(
        focal_loss_pallas(logits, target, alpha, gamma, "mean"))
    ref = _focal_loss_ref(logits, target, alpha, gamma, "mean")
    assert jnp.allclose(loss, ref, rtol=2e-3, atol=2e-3), (loss, ref)

    # 2) Classification-style (N, C) usage, reduction='none' — rows path.
    logits2 = jax.random.normal(k3, (8, 60), dtype=jnp.float32)
    target2 = jax.random.randint(k4, (8,), 0, 60, dtype=jnp.int32)
    loss2 = jax.block_until_ready(
        focal_loss_pallas(logits2, target2, alpha, gamma, "none"))
    ref2 = _focal_loss_ref(logits2, target2, alpha, gamma, "none")
    assert jnp.allclose(loss2, ref2, rtol=2e-3, atol=2e-3), (loss2, ref2)

    # 3) Unaligned spatial extent (S = 200): ragged last lane block, no padding.
    N3, C3, H3, W3 = 2, 5, 10, 20
    logits3 = jax.random.normal(k5, (N3, C3, H3, W3), dtype=jnp.float32)
    target3 = jax.random.randint(k6, (N3, H3, W3), 0, C3, dtype=jnp.int32)
    loss3 = jax.block_until_ready(
        focal_loss_pallas(logits3, target3, alpha, gamma, "sum"))
    ref3 = _focal_loss_ref(logits3, target3, alpha, gamma, "sum")
    assert jnp.allclose(loss3, ref3, rtol=5e-3, atol=2e-3), (loss3, ref3)

    print("KERNEL_OK")
</pallas_src>

<mosaic_0001>
module attributes {stable_mosaic.version = 11 : i64} {
  func.func @_focal_kernel_spatial(%arg0: i32, %arg1: i32, %arg2: memref<1x10x128xf32, #tpu.memory_space<vmem>>, %arg3: memref<1x1x128xi16, #tpu.memory_space<vmem>>, %arg4: memref<1x1x128xf32, #tpu.memory_space<vmem>>) attributes {dimension_semantics = [#tpu.dimension_semantics<parallel>, #tpu.dimension_semantics<parallel>], iteration_bounds = array<i64: 2, 1>, scalar_prefetch = 0 : i64, scratch_operands = 0 : i64, tpu.core_type = #tpu.core_type<tc>, window_params = [{transform_indices = @transform_0, window_bounds = array<i64: 1, 10, 128>}, {transform_indices = @transform_1, window_bounds = array<i64: 1, 1, 128>}, {transform_indices = @transform_2, window_bounds = array<i64: 1, 1, 128>}]} {
    %c0 = arith.constant 0 : index
    %c0_0 = arith.constant 0 : index
    %c0_1 = arith.constant 0 : index
    %0 = vector.load %arg2[%c0, %c0_0, %c0_1] : memref<1x10x128xf32, #tpu.memory_space<vmem>>, vector<1x10x128xf32>
    %1 = vector.shape_cast %0 : vector<1x10x128xf32> to vector<10x128xf32>
    %cst = arith.constant dense<0xFF800000> : vector<128xf32>
    %2 = vector.multi_reduction <maximumf>, %1, %cst [0] : vector<10x128xf32> to vector<128xf32>
    %3 = vector.shape_cast %2 : vector<128xf32> to vector<1x128xf32>
    %4 = vector.broadcast %3 : vector<1x128xf32> to vector<10x128xf32>
    %5 = arith.subf %1, %4 : vector<10x128xf32>
    %6 = math.exp %5 : vector<10x128xf32>
    %cst_2 = arith.constant dense<0.000000e+00> : vector<128xf32>
    %7 = vector.multi_reduction <add>, %6, %cst_2 [0] : vector<10x128xf32> to vector<128xf32>
    %8 = vector.shape_cast %7 : vector<128xf32> to vector<1x128xf32>
    %9 = math.log %8 : vector<1x128xf32>
    %10 = vector.broadcast %9 : vector<1x128xf32> to vector<10x128xf32>
    %11 = arith.subf %5, %10 : vector<10x128xf32>
    %12 = tpu.reciprocal %8 {approx = true} : vector<1x128xf32> -> vector<1x128xf32>
    %13 = vector.broadcast %12 : vector<1x128xf32> to vector<10x128xf32>
    %14 = arith.mulf %6, %13 : vector<10x128xf32>
    %cst_3 = arith.constant 1.000000e+00 : f32
    %15 = vector.broadcast %cst_3 : f32 to vector<10x128xf32>
    %16 = arith.subf %15, %14 : vector<10x128xf32>
    %17 = arith.mulf %16, %16 : vector<10x128xf32>
    %18 = arith.mulf %17, %11 : vector<10x128xf32>
    %19 = tpu.iota {dimensions = array<i32: 0>} : vector<10x128xi32>
    %c0_4 = arith.constant 0 : index
    %c0_5 = arith.constant 0 : index
    %c0_6 = arith.constant 0 : index
    %20 = vector.load %arg3[%c0_4, %c0_5, %c0_6] : memref<1x1x128xi16, #tpu.memory_space<vmem>>, vector<1x1x128xi16>
    %21 = vector.shape_cast %20 : vector<1x1x128xi16> to vector<1x128xi16>
    %22 = arith.extsi %21 : vector<1x128xi16> to vector<1x128xi32>
    %23 = vector.broadcast %22 : vector<1x128xi32> to vector<10x128xi32>
    %24 = arith.cmpi eq, %19, %23 : vector<10x128xi32>
    %25 = arith.extui %24 : vector<10x128xi1> to vector<10x128xi32>
    %26 = arith.sitofp %25 : vector<10x128xi32> to vector<10x128xf32>
    %cst_7 = arith.constant 9.99999997E-7 : f32
    %27 = vector.broadcast %cst_7 : f32 to vector<10x128xf32>
    %28 = arith.addf %26, %27 : vector<10x128xf32>
    %29 = arith.mulf %28, %18 : vector<10x128xf32>
    %cst_8 = arith.constant dense<0.000000e+00> : vector<128xf32>
    %30 = vector.multi_reduction <add>, %29, %cst_8 [0] : vector<10x128xf32> to vector<128xf32>
    %31 = vector.shape_cast %30 : vector<128xf32> to vector<1x128xf32>
    %cst_9 = arith.constant -5.000000e-01 : f32
    %32 = vector.broadcast %cst_9 : f32 to vector<1x128xf32>
    %33 = arith.mulf %32, %31 : vector<1x128xf32>
    %c0_10 = arith.constant 0 : index
    %c0_11 = arith.constant 0 : index
    %c0_12 = arith.constant 0 : index
    %34 = vector.load %arg4[%c0_10, %c0_11, %c0_12] : memref<1x1x128xf32, #tpu.memory_space<vmem>>, vector<1x1x128xf32>
    %35 = vector.shape_cast %34 : vector<1x1x128xf32> to vector<1x128xf32>
    %36 = vector.shape_cast %33 : vector<1x128xf32> to vector<1x1x128xf32>
    tpu.vector_store %arg4[%c0_10, %c0_11, %c0_12], %36 {strides = array<i32>} : memref<1x1x128xf32, #tpu.memory_space<vmem>>, vector<1x1x128xf32>,
    return
  }
  func.func @transform_0(%arg0: i32, %arg1: i32) -> (i32, i32, i32) {
    %c0_i32 = arith.constant 0 : i32
    %c0_i32_0 = arith.constant 0 : i32
    return %arg0, %c0_i32, %arg1 : i32, i32, i32
  }
  func.func @transform_1(%arg0: i32, %arg1: i32) -> (i32, i32, i32) {
    %c0_i32 = arith.constant 0 : i32
    %c0_i32_0 = arith.constant 0 : i32
    return %arg0, %c0_i32, %arg1 : i32, i32, i32
  }
  func.func @transform_2(%arg0: i32, %arg1: i32) -> (i32, i32, i32) {
    %c0_i32 = arith.constant 0 : i32
    %c0_i32_0 = arith.constant 0 : i32
    return %arg0, %c0_i32, %arg1 : i32, i32, i32
  }
}

</mosaic_0001>

<bundles_post_ra>
// kernel: tpu_custom_call.1
= control target key start
LH: loop header
LB: loop body
LE: loop exit
PB: predicated region body
PF: predicated region fallthrough
CT: control target
= control target key end

     0   :  { %7 = vsyncpa [#allocation3], 0  ;;  %s630_s0 = inlined_call_operand.vmem [shape: f32[2,10,128], index: 0, kind: input, shape index: {}]   ;;  %s631_s1 = inlined_call_operand.vmem [shape: s16[2,1,128], index: 1, kind: input, shape index: {}]   ;;  %s632_s2 = inlined_call_operand.hbm [shape: f32[2,1,128], index: 2, kind: output, shape index: {}]  }
   0x1   :  { %9 = vsyncpa [#allocation3 + $0x1], 0  ;;  %s523_s9 = smov 0   ;;  %s525_s10 = smov 0  }
   0x2   :  { %s527_s11 = smov 0   ;;  %s529_s12 = smov 0  }
   0x3   :  { %s531_s13 = smov 0   ;;  %s533_s14 = smov 0  }
   0x4 LB: > { %s351_s15 = sadd.s32 4294967295, %s505_s14   ;;  %s352_s16 = sadd.s32 4294967294, %s505_s14   ;;  %s505_s14 = sphi %s533_s14, %s15_s14   ;;  %s501_s13 = sphi %s531_s13, %s639_s13   ;;  %s497_s12 = sphi %s529_s12, %s638_s12   ;;  %s493_s11 = sphi %s527_s11, %s637_s11   ;;  %s489_s10 = sphi %s525_s10, %s636_s10   ;;  %s485_s9 = sphi %s523_s9, %s635_s9  }
   0x5   : > { %s27_s17 = sadd.s32 1, %s501_s13  ;;  %s92_s18 = sadd.s32 1, %s493_s11 }
   0x6   : > { %p29_p0 = scmp.ge.s32.totalorder %s27_s17, 2  ;;  %p102_p1 = scmp.ne.s32.totalorder %s493_s11, %s489_s10 }
   0x7   : > { %p103_p2 = scmp.eq.s32.totalorder %s351_s15, 1  ;;  %p108_p3 = scmp.ne.s32.totalorder %s489_s10, %s485_s9 }
   0x8   : > { %s641_s17 = smov (%p29_p0, %s27_s17), 0  ;;  %p109_p5 = scmp.eq.s32.totalorder %s352_s16, 1 }
   0x9   : > { %p563_p4 = por %p103_p2, %p102_p1  ;;  %s87_s20 = ssub.s32 %s501_s13, %s641_s17 }
   0xa   : > { %p355_p6 = scmp.ge.s32.totalorder %s505_s14, 1  ;;  %p90_p7 = scmp.eq.s32.totalorder %s87_s20, 0 }
   0xb   : > { %p570_p8 = por %p109_p5, %p108_p3  ;;  %p147_p9 = scmp.lt.s32.totalorder %s505_s14, 3 }
   0xc   : > { %s576_s22 = scalar_select %p90_p7, %s493_s11, %s92_s18  }
   0xd   : > { %p148_p10 = pnand %p355_p6, %p147_p9 }
   0xe   : > { %p177_p11 = scmp.lt.s32.totalorder (!%p148_p10), %s497_s12, 1  ;;  %s175_s3 = sand.u32 (!%p148_p10), 1, %s489_s10  }
   0xf   : > { %151 = sbr.rel (%p148_p10) target bundleno = 105 (0x69), region = 28  ;;  %s265_s6 = scalar_lea.hbm (!%p148_p10), %s632_s2, %s497_s12 }
  0x10   : > { %s176_s7 = scalar_lea.vmem (!%p148_p10), [#allocation2], %s175_s3  ;;  %s269_s15 = sshll.u32 (!%p148_p10), %s265_s6, 4  ;;  %s270_s15 = int_to_ptr.hbm [resolvable:$true] %s269_s15 }
  0x11   : > { %s267_s8 = sshll.u32 (!%p148_p10), %s176_s7, 4  ;;  %s256_s16 = scalar_lea.sflag (!%p148_p10), [#allocation3], %s175_s3  ;;  %s268_s8 = int_to_ptr.vmem [resolvable:$true] %s267_s8 }
  0x12   : > { %s441_s18 = sshra.s32 (!%p148_p10), %s270_s15, 4  ;;  %s442_s18 = int_to_ptr.hbm [resolvable:$true] %s441_s18 }
  0x13   : > { %s443_s20 = scalar_lea.hbm (!%p148_p10), %s442_s18, 1  ;;  %p448_p1 = scmp.lt.s32.totalorder (!%p148_p10), %s442_s18, %s632_s2 }
  0x14   : > { %s580_s23 = scalar_select %p177_p11, %s497_s12, 1  ;;  %vm193_vm0 = vcmask 1041408   ;;  %v229_v22 = vlaneseq  ;;  %v507_v35 = vmov 0.0  }
  0x15   : > { %p444_p12 = scmp.ne.s32.totalorder %s442_s18, %s443_s20  ;;  %s447_s12 = scalar_lea.hbm %s632_s2, 2 }
  0x16   : > { %s362_s24 = sshll.u32 %s580_s23, 4  ;;  %s190_s30 = scalar_lea.vmem %s631_s1, %s580_s23  ;;  %v230_v26 = vshrl.u32 %v229_v22, 7 }
  0x17   : > { %s184_s27 = scalar_lea.vmem %s630_s0, %s362_s24  ;;  %v232_v23 = vld [vmem:[%s190_s30] sm:$0x1]  ;;  %p445_p13 = pnand %p444_p12, %p563_p4 }
  0x18   : > { %v191_v0 = vld [vmem:[%s184_s27] sm:$0xff]  ;;  %v192_v1 = vld [vmem:[%s184_s27 + $0x8] sm:$0x3]  ;;  %v233_v27 = vunpack.c.l.b16 %v232_v23  ;;  %v231_v28 = vadd.s32 8, %v230_v26  ;;  %p449_p2 = scmp.lt.s32.totalorder %s447_s12, %s443_s20 }
  0x19   : > { %v194_v2 = vsel %vm193_vm0, %v192_v1, -inf  ;;  %p446_p0 = pneg %p445_p13 }
  0x1a   : > { %v195_v3 = vmax.f32 %v191_v0, %v194_v2  ;;  %v234_v29 = vperm.slane %v233_v27, 0  ;;  %p450_p3 = por %p449_p2, %p448_p1 }
  0x1c   : > { %v196_v4 = vrot.slane %v195_v3, 4  ;;  %vm235_vm1 = vcmp.eq.s32.totalorder %v230_v26, %v234_v29  ;;  %vm236_vm2 = vcmp.eq.s32.totalorder %v231_v28, %v234_v29  ;;  %p451_p5 = pnand %p450_p3, %p446_p0 }
  0x1d   : > { %v358_v36 = vsel %vm235_vm1, 1.0, %v507_v35  ;;  %v359_v37 = vsel %vm236_vm2, 1.0, %v507_v35 }
  0x1e   : > { %v197_v5 = vmax.f32 %v195_v3, %v196_v4  ;;  %v241_v44 = vadd.f32 1e-06, %v358_v36  ;;  %v242_v45 = vadd.f32 1e-06, %v359_v37 }
  0x20   : > { %v198_v6 = vrot.slane %v197_v5, 2 }
  0x22   : > { %v199_v7 = vmax.f32 %v197_v5, %v198_v6 }
  0x24   : > { %v200_v8 = vrot.slane %v199_v7, 1 }
  0x26   : > { %v201_v9 = vmax.f32 %v199_v7, %v200_v8 }
  0x28   : > { %v202_v10 = vsub.f32 %v191_v0, %v201_v9  ;;  %v203_v11 = vsub.f32 %v192_v1, %v201_v9 }
  0x2a   : > { %v204_v12 = vmul.f32 1.442695, %v202_v10  ;;  %v206_v13 = vmul.f32 1.442695, %v203_v11 }
  0x2c   : > { %419 = vpow2.f32 %v204_v12 }
  0x2d   : > { %421 = vpow2.f32 %v206_v13 }
  0x32   : > { %v420_v14 = vpop.eup %419 }
  0x33   : > { %v422_v15 = vpop.eup %421 }
  0x34   : > { %v208_v16 = vsel %vm193_vm0, %v422_v15, 0.0 }
  0x35   : > { %v209_v17 = vadd.f32 %v420_v14, %v208_v16 }
  0x37   : > { %v210_v18 = vrot.slane %v209_v17, 4 }
  0x39   : > { %v211_v19 = vadd.f32 %v210_v18, %v209_v17 }
  0x3b   : > { %v212_v20 = vrot.slane %v211_v19, 2 }
  0x3d   : > { %v213_v21 = vadd.f32 %v212_v20, %v211_v19 }
  0x3f   : > { %v214_v24 = vrot.slane %v213_v21, 1 }
  0x41   : > { %v215_v25 = vadd.f32 %v214_v24, %v213_v21 }
  0x43   : > { %423 = vlog2.f32 %v215_v25 }
  0x44   : > { %425 = vrcp.f32 %v215_v25 }
  0x49   : > { %v424_v30 = vpop.eup %423 }
  0x4a   : > { %v426_v31 = vpop.eup %425  ;;  %v217_v32 = vmul.f32 0.6931472, %v424_v30 }
  0x4b   : > { %v221_v33 = vmul.f32 %v426_v31, %v420_v14  ;;  %v222_v34 = vmul.f32 %v426_v31, %v422_v15 }
  0x4c   : > { %v218_v38 = vsub.f32 %v202_v10, %v217_v32  ;;  %v219_v39 = vsub.f32 %v203_v11, %v217_v32 }
  0x4d   : > { %v223_v40 = vsub.f32 1.0, %v221_v33  ;;  %v224_v41 = vsub.f32 1.0, %v222_v34 }
  0x4f   : > { %v225_v42 = vmul.f32 %v223_v40, %v223_v40  ;;  %v226_v43 = vmul.f32 %v224_v41, %v224_v41 }
  0x51   : > { %v227_v46 = vmul.f32 %v225_v42, %v218_v38  ;;  %v228_v47 = vmul.f32 %v226_v43, %v219_v39 }
  0x53   : > { %v243_v48 = vmul.f32 %v241_v44, %v227_v46  ;;  %v244_v49 = vmul.f32 %v242_v45, %v228_v47 }
  0x55   : > { %v245_v50 = vsel %vm193_vm0, %v244_v49, 0.0 }
  0x56   : > { %v246_v51 = vadd.f32 %v245_v50, %v243_v48 }
  0x58   : > { %v247_v52 = vrot.slane %v246_v51, 4 }
  0x5a   : > { %v248_v53 = vadd.f32 %v247_v52, %v246_v51 }
  0x5c   : > { %v249_v54 = vrot.slane %v248_v53, 2 }
  0x5e   : > { %v250_v55 = vadd.f32 %v249_v54, %v248_v53 }
  0x60   : > { %v251_v56 = vrot.slane %v250_v55, 1 }
  0x62   : > { %v252_v57 = vadd.f32 %v251_v56, %v250_v55 }
  0x64   : > { %v253_v58 = vmul.f32 -0.5, %v252_v57 }
  0x66   : > { %254 = vst [vmem:[%s176_s7] sm:$0x1] %v253_v58 }
  0x67   : > { %454 = shalt.err (!%p451_p5)
}
  0x68   : > { %363 = dma.vmem_to_hbm [thread:$0]  (%p563_p4), %s268_s8, 16, %s270_s15, %s256_s16  }
  0x69 PF: > { %p369_p6 = scmp.ge.s32.totalorder %s505_s14, 2  ;;  %s281_s27 = sand.u32 1, %s485_s9  }
  0x6a   : > { %s282_s28 = scalar_lea.sflag [#allocation3], %s281_s27 }
  0x6b   : > { %p366_p7 = pnand %p369_p6, %p570_p8 }
  0x6d   : > { %p367_p9 = pneg %p366_p7 }
  0x6f   : > { %480 = dma.done.wait (%p367_p9), %s282_s28, 16  }
  0x70   : > { %482 = vsyncadd (%p367_p9), %s282_s28, 4294967280  ;;  %s15_s14 = sadd.s32 1, %s505_s14   ;;  %s635_s9 = smov %s489_s10 }
  0x71   : > { %p12_p10 = scmp.ge.s32.totalorder %s15_s14, 4   ;;  %s636_s10 = smov %s493_s11 }
  0x72   : > { %s637_s11 = smov %s576_s22  ;;  %s638_s12 = smov %s501_s13 }
  0x73   : > { %s639_s13 = smov %s641_s17  ;;  %14 = sbr.rel (!%p12_p10) target bundleno = 4 (0x4), region = 66 }
  0x78   :  { %287 = vsyncpa [#allocation3], 1 }
  0x79   :  { %289 = vsyncpa [#allocation3 + $0x1], 1 }

</bundles_post_ra>
